<compile_context>
chip_gen: v7x
topology: tpu7x:2x2x1
jax: 0.10.0
libtpu: 0.0.40
codegen_flags: <defaults>
</compile_context>

<pallas_src>
import functools

import jax
import jax.numpy as jnp
from jax import lax
from jax.experimental import pallas as pl
from jax.experimental.pallas import tpu as pltpu

_LANES = 1024       # lane-dense last dim (multiple of 128 -> unmasked vst)
_TILE_ROWS = 512    # 512 * 1024 * 4B = 2 MiB f32 block


def _dropout_kernel(seed_ref, x_ref, o_ref, *, threshold, scale, tile_rows, lanes):
    """Elementwise dropout on one (tile_rows, lanes) block."""
    shape = x_ref.shape
    row0 = pl.program_id(0) * tile_rows
    rows = lax.broadcasted_iota(jnp.int32, shape, 0) + row0
    cols = lax.broadcasted_iota(jnp.int32, shape, 1)
    # Global flat element index (counter for the hash).
    idx = rows.astype(jnp.uint32) * jnp.uint32(lanes) + cols.astype(jnp.uint32)

    # Mix in the scalar seed, then murmur3 finalizer (good avalanche).
    h = idx + seed_ref[0].astype(jnp.uint32) * jnp.uint32(0x9E3779B9)
    h = h ^ (h >> jnp.uint32(16))
    h = h * jnp.uint32(0x85EBCA6B)
    h = h ^ (h >> jnp.uint32(13))
    h = h * jnp.uint32(0xC2B2AE35)
    h = h ^ (h >> jnp.uint32(16))

    # Integer threshold compare on the top 31 bits (signed, cheap on VPU).
    r31 = (h >> jnp.uint32(1)).astype(jnp.int32)
    keep = r31 >= jnp.int32(threshold)

    # f32 math on vregs; I/O stays in the original (possibly narrow) dtype.
    x = x_ref[...].astype(jnp.float32)
    y = jnp.where(keep, x * jnp.float32(scale), jnp.float32(0.0))
    o_ref[...] = y.astype(o_ref.dtype)


def dropout_v2_forward(x, seed_buf, *, p=0.5, training=True):
    """Forward pass of DroupoutV2 (x: any-shape float array, NCHW in usage)."""
    if not training:
        return x
    p = float(p)
    if p <= 0.0:
        return x
    if p >= 1.0:
        return jnp.zeros_like(x)

    orig_shape = x.shape
    dtype = x.dtype
    total = x.size

    # Flatten to a lane-dense 2-D slab in the ORIGINAL dtype.
    pad = (-total) % _LANES
    x_flat = x.reshape(-1)
    if pad:
        x_flat = jnp.pad(x_flat, (0, pad))
    rows = (total + pad) // _LANES
    x2d = x_flat.reshape(rows, _LANES)

    # Tile choice: full-extent block for small inputs, 512-row tiles otherwise.
    if rows <= _TILE_ROWS:
        tile_r = rows
        grid = (1,)
    else:
        tile_r = _TILE_ROWS
        grid = (pl.cdiv(rows, _TILE_ROWS),)

    # Keep prob = 1 - p up to 2^-31 quantization.
    threshold = min(int(round(p * (1 << 31))), (1 << 31) - 1)
    scale = 1.0 / (1.0 - p)

    # Scalar int32 seed derived from the module's float seed buffer.
    seed_scalar = jnp.asarray(seed_buf[0], dtype=jnp.float32).astype(jnp.int32).reshape((1,))

    kernel = functools.partial(
        _dropout_kernel,
        threshold=threshold,
        scale=scale,
        tile_rows=tile_r,
        lanes=_LANES,
    )

    call_kwargs = dict(
        out_shape=jax.ShapeDtypeStruct((rows, _LANES), dtype),
        grid=grid,
        in_specs=[
            pl.BlockSpec(memory_space=pltpu.MemorySpace.SMEM),   # seed scalar
            pl.BlockSpec((tile_r, _LANES), lambda i: (i, 0)),    # x tile (VMEM)
        ],
        out_specs=pl.BlockSpec((tile_r, _LANES), lambda i: (i, 0)),
        cost_estimate=pl.CostEstimate(
            flops=3 * rows * _LANES,
            transcendentals=0,
            bytes_accessed=2 * rows * _LANES * x.dtype.itemsize,
        ),
    )
    # TPU-specific knobs (megacore sharding on v7x, explicit VMEM budget).
    if jax.default_backend() == "tpu":
        call_kwargs["compiler_params"] = pltpu.CompilerParams(
            dimension_semantics=("parallel",),
            vmem_limit_bytes=32 * 1024 * 1024,
        )

    out2d = pl.pallas_call(kernel, **call_kwargs)(seed_scalar, x2d)

    if pad:
        return out2d.reshape(-1)[:total].reshape(orig_shape)
    return out2d.reshape(orig_shape)


class DroupoutV2:
    """JAX/Pallas port of the PyTorch DroupoutV2 module (forward only)."""

    def __init__(self, p=0.5, inplace=False, max_seed=2 ** 10 - 1, key=None):
        self.p = p
        if key is None:
            key = jax.random.PRNGKey(0)
        # Deterministic stand-in for np.random.uniform(1, max_seed, (32*1024*12,)).
        self.seed = jax.random.uniform(
            key, shape=(32 * 1024 * 12,), dtype=jnp.float32,
            minval=1.0, maxval=float(max_seed),
        )
        self.training = True

    def __call__(self, x):
        return dropout_v2_forward(x, self.seed, p=self.p, training=self.training)


if __name__ == "__main__":
    key = jax.random.PRNGKey(0)
    k_seed, k_x = jax.random.split(key)

    # Small NCHW input consistent with a conv-net feature map.
    x = jax.random.normal(k_x, (2, 4, 16, 16), dtype=jnp.float32)

    module = DroupoutV2(p=0.5, key=k_seed)

    # Training-mode forward (the Pallas hot path).
    y = jax.block_until_ready(module(x))

    # Sanity checks on dropout semantics.
    scale = 1.0 / (1.0 - module.p)
    kept = y != 0.0
    assert bool(jnp.allclose(jnp.where(kept, y, 0.0),
                             jnp.where(kept, x * scale, 0.0), atol=1e-5))
    keep_frac = float(jnp.mean(kept.astype(jnp.float32)))
    assert 0.2 < keep_frac < 0.8, f"unexpected keep fraction {keep_frac}"

    # Eval-mode forward is identity.
    module.training = False
    y_eval = jax.block_until_ready(module(x))
    assert bool(jnp.array_equal(y_eval, x))

    print("KERNEL_OK")
</pallas_src>

<mosaic_0001>
module attributes {stable_mosaic.version = 11 : i64} {
  func.func @_dropout_kernel(%arg0: i32, %arg1: memref<1xi32, #tpu.memory_space<smem>>, %arg2: memref<2x1024xf32, #tpu.memory_space<vmem>>, %arg3: memref<2x1024xf32, #tpu.memory_space<vmem>>) attributes {dimension_semantics = [#tpu.dimension_semantics<arbitrary>], iteration_bounds = array<i64: 1>, scalar_prefetch = 0 : i64, scratch_operands = 0 : i64, tpu.core_type = #tpu.core_type<tc>, window_params = [{transform_indices = @transform_0, window_bounds = array<i64: 1>}, {transform_indices = @transform_1, window_bounds = array<i64: 2, 1024>}, {transform_indices = @transform_2, window_bounds = array<i64: 2, 1024>}]} {
    %c2_i32 = arith.constant 2 : i32
    %0 = arith.muli %arg0, %c2_i32 : i32
    %1 = tpu.iota {dimensions = array<i32: 0>} : vector<2x1024xi32>
    %2 = vector.broadcast %0 : i32 to vector<2x1024xi32>
    %3 = arith.addi %1, %2 : vector<2x1024xi32>
    %4 = tpu.iota {dimensions = array<i32: 1>} : vector<2x1024xi32>
    %c1024_i32 = arith.constant 1024 : i32
    %5 = vector.broadcast %c1024_i32 : i32 to vector<2x1024xi32>
    %6 = arith.muli %3, %5 : vector<2x1024xi32>
    %7 = arith.addi %6, %4 : vector<2x1024xi32>
    %c0 = arith.constant 0 : index
    %8 = memref.load %arg1[%c0] : memref<1xi32, #tpu.memory_space<smem>>
    %c-1640531527_i32 = arith.constant -1640531527 : i32
    %9 = arith.muli %8, %c-1640531527_i32 : i32
    %10 = vector.broadcast %9 : i32 to vector<2x1024xi32>
    %11 = arith.addi %7, %10 : vector<2x1024xi32>
    %c16_i32 = arith.constant 16 : i32
    %12 = vector.broadcast %c16_i32 : i32 to vector<2x1024xi32>
    %13 = arith.shrui %11, %12 : vector<2x1024xi32>
    %14 = arith.xori %11, %13 : vector<2x1024xi32>
    %c-2048144789_i32 = arith.constant -2048144789 : i32
    %15 = vector.broadcast %c-2048144789_i32 : i32 to vector<2x1024xi32>
    %16 = arith.muli %14, %15 : vector<2x1024xi32>
    %c13_i32 = arith.constant 13 : i32
    %17 = vector.broadcast %c13_i32 : i32 to vector<2x1024xi32>
    %18 = arith.shrui %16, %17 : vector<2x1024xi32>
    %19 = arith.xori %16, %18 : vector<2x1024xi32>
    %c-1028477387_i32 = arith.constant -1028477387 : i32
    %20 = vector.broadcast %c-1028477387_i32 : i32 to vector<2x1024xi32>
    %21 = arith.muli %19, %20 : vector<2x1024xi32>
    %c16_i32_0 = arith.constant 16 : i32
    %22 = vector.broadcast %c16_i32_0 : i32 to vector<2x1024xi32>
    %23 = arith.shrui %21, %22 : vector<2x1024xi32>
    %24 = arith.xori %21, %23 : vector<2x1024xi32>
    %c1_i32 = arith.constant 1 : i32
    %25 = vector.broadcast %c1_i32 : i32 to vector<2x1024xi32>
    %26 = arith.shrui %24, %25 : vector<2x1024xi32>
    %c1073741824_i32 = arith.constant 1073741824 : i32
    %27 = vector.broadcast %c1073741824_i32 : i32 to vector<2x1024xi32>
    %28 = arith.cmpi sge, %26, %27 : vector<2x1024xi32>
    %c0_1 = arith.constant 0 : index
    %c0_2 = arith.constant 0 : index
    %29 = vector.load %arg2[%c0_1, %c0_2] : memref<2x1024xf32, #tpu.memory_space<vmem>>, vector<2x1024xf32>
    %cst = arith.constant 2.000000e+00 : f32
    %30 = vector.broadcast %cst : f32 to vector<2x1024xf32>
    %31 = arith.mulf %29, %30 : vector<2x1024xf32>
    %cst_3 = arith.constant 0.000000e+00 : f32
    %32 = vector.broadcast %cst_3 : f32 to vector<2x1024xf32>
    %33 = arith.select %28, %31, %32 : vector<2x1024xi1>, vector<2x1024xf32>
    %c0_4 = arith.constant 0 : index
    %c0_5 = arith.constant 0 : index
    %34 = vector.load %arg3[%c0_4, %c0_5] : memref<2x1024xf32, #tpu.memory_space<vmem>>, vector<2x1024xf32>
    tpu.vector_store %arg3[%c0_4, %c0_5], %33 {strides = array<i32>} : memref<2x1024xf32, #tpu.memory_space<vmem>>, vector<2x1024xf32>,
    return
  }
  func.func @transform_0(%arg0: i32) -> i32 {
    %c0_i32 = arith.constant 0 : i32
    %c0_i32_0 = arith.constant 0 : i32
    return %c0_i32 : i32
  }
  func.func @transform_1(%arg0: i32) -> (i32, i32) {
    %c0_i32 = arith.constant 0 : i32
    %c0_i32_0 = arith.constant 0 : i32
    return %arg0, %c0_i32 : i32, i32
  }
  func.func @transform_2(%arg0: i32) -> (i32, i32) {
    %c0_i32 = arith.constant 0 : i32
    %c0_i32_0 = arith.constant 0 : i32
    return %arg0, %c0_i32 : i32, i32
  }
}

</mosaic_0001>

<bundles_post_ra>
// kernel: tpu_custom_call.1
= control target key start
LH: loop header
LB: loop body
LE: loop exit
PB: predicated region body
PF: predicated region fallthrough
CT: control target
= control target key end

     0   :  { %8 = vsyncpa [#allocation4], 0  ;;  %s375_s0 = inlined_call_operand.<no memory space> [shape: s32[1], index: 0, kind: input, shape index: {}]   ;;  %s376_s1 = inlined_call_operand.hbm [shape: f32[2,1024], index: 1, kind: input, shape index: {}]   ;;  %s377_s2 = inlined_call_operand.hbm [shape: f32[2,1024], index: 2, kind: output, shape index: {}]  }
   0x1   :  { %9 = vsyncpa [#allocation5], 0  ;;  %s307_s9 = smov [#allocation3]   ;;  %s259_s13 = scalar_lea.hbm %s376_s1, 256 }
   0x2   :  { %s18_s10 = sshll.u32 %s307_s9, 4  ;;  %p260_p0 = scmp.ne.s32.totalorder %s376_s1, %s259_s13  ;;  %s19_s10 = int_to_ptr.vmem [resolvable:$true] %s18_s10 }
   0x3   :  { %p263_p1 = scmp.lt.u32.totalorder %s259_s13, %s376_s1 }
   0x5   :  { %p265_p2 = pnand %p263_p1, %p260_p0 }
   0x7   :  { %268 = shalt.err (!%p265_p2)
}
   0x8   :  { %s269_s18 = scalar_lea.vmem %s19_s10, 256  ;;  %p274_p4 = scmp.lt.s32.totalorder %s19_s10, %s19_s10 }
   0x9   :  { %p270_p3 = scmp.ne.s32.totalorder %s19_s10, %s269_s18  ;;  %p275_p5 = scmp.lt.s32.totalorder %s269_s18, %s269_s18 }
   0xb   :  { %p276_p6 = por %p275_p5, %p274_p4 }
   0xd   :  { %p277_p7 = pnand %p276_p6, %p270_p3 }
   0xf   :  { %280 = shalt.err (!%p277_p7)
}
  0x10   :  { %21 = dma.hbm_to_vmem [thread:$0]  %s376_s1, 256, %s19_s10, [#allocation4]  }
  0x11   :  { %303 = dma.done.wait [#allocation4], 256  }
  0x12   :  { %304 = vsyncadd [#allocation4], 4294967040  ;;  %v26_v0 = vlaneseq  ;;  %s49_s23 = smul.u32 2654435769, %s375_s0  ;;  %v308_v1 = vmov 1983009808  }
  0x13   :  { %v147_v2 = vunpack.c.l.s4 %v308_v1  ;;  %v139_v19 = vld [vmem:[#allocation3] sm:$0xff]  ;;  %s309_s0 = smov [#allocation6]  }
  0x14   :  { %v27_v3 = vshrl.u32 %v26_v0, 7  ;;  %v31_v4 = vand.u32 127, %v26_v0  ;;  %v50_v5 = vstv %s49_s23  ;;  %v141_v28 = vmul.f32 2.0, %v139_v19  ;;  %s247_s1 = sshll.u32 %s309_s0, 4  ;;  %s248_s1 = int_to_ptr.vmem [resolvable:$true] %s247_s1 }
  0x15   :  { %v148_v6 = vunpack.c.0.s8 %v147_v2  ;;  %s281_s24 = scalar_lea.vmem %s248_s1, 256  ;;  %p286_p9 = scmp.lt.s32.totalorder %s248_s1, %s248_s1 }
  0x16   :  { %v32_v7 = vadd.s32 128, %v31_v4  ;;  %v33_v8 = vadd.s32 256, %v31_v4  ;;  %v34_v9 = vadd.s32 384, %v31_v4  ;;  %v39_v10 = vmul.u32 1024, %v27_v3  ;;  %p282_p8 = scmp.ne.s32.totalorder %s248_s1, %s281_s24  ;;  %p287_p10 = scmp.lt.s32.totalorder %s281_s24, %s281_s24 }
  0x17   :  { %v340_v11 = vsub.s32 %v148_v6, %v27_v3  ;;  %v35_v12 = vadd.s32 512, %v31_v4  ;;  %v36_v13 = vadd.s32 640, %v31_v4  ;;  %v37_v14 = vadd.s32 768, %v31_v4 }
  0x18   :  { %v40_v15 = vadd.s32 %v39_v10, %v31_v4  ;;  %v41_v16 = vadd.s32 %v39_v10, %v32_v7  ;;  %v42_v17 = vadd.s32 %v39_v10, %v33_v8  ;;  %v43_v18 = vadd.s32 %v39_v10, %v34_v9  ;;  %p288_p11 = por %p287_p10, %p286_p9 }
  0x19   :  { %v38_v20 = vadd.s32 896, %v31_v4  ;;  %v44_v21 = vadd.s32 %v39_v10, %v35_v12  ;;  %v45_v22 = vadd.s32 %v39_v10, %v36_v13  ;;  %v46_v23 = vadd.s32 %v39_v10, %v37_v14 }
  0x1a   :  { %v51_v24 = vadd.s32 %v50_v5, %v40_v15  ;;  %v52_v25 = vadd.s32 %v50_v5, %v41_v16  ;;  %v53_v26 = vadd.s32 %v50_v5, %v42_v17  ;;  %v54_v27 = vadd.s32 %v50_v5, %v43_v18  ;;  %p289_p12 = pnand %p288_p11, %p282_p8 }
  0x1b   :  { %v47_v29 = vadd.s32 %v39_v10, %v38_v20  ;;  %v55_v30 = vadd.s32 %v50_v5, %v44_v21  ;;  %v56_v31 = vadd.s32 %v50_v5, %v45_v22  ;;  %v145_v36 = vcombine.high %v141_v28, %v141_v28 }
  0x1c   :  { %v59_v32 = vshrl.u32 %v51_v24, 16  ;;  %v60_v33 = vshrl.u32 %v52_v25, 16  ;;  %v61_v34 = vshrl.u32 %v53_v26, 16  ;;  %v62_v35 = vshrl.u32 %v54_v27, 16 }
  0x1d   :  { %v343_v37 = vrot.slane %v141_v28, %v340_v11  ;;  %v57_v38 = vadd.s32 %v50_v5, %v46_v23  ;;  %v58_v39 = vadd.s32 %v50_v5, %v47_v29  ;;  %v346_v44 = vrot.slane %v145_v36, %v340_v11 }
  0x1e   :  { %v67_v40 = vxor.u32 %v59_v32, %v51_v24  ;;  %v68_v41 = vxor.u32 %v60_v33, %v52_v25  ;;  %v69_v42 = vxor.u32 %v61_v34, %v53_v26  ;;  %v70_v43 = vxor.u32 %v62_v35, %v54_v27 }
  0x1f   :  { %v160_v45 = vcombine.high %v343_v37, %v343_v37  ;;  %v63_v46 = vshrl.u32 %v55_v30, 16  ;;  %v64_v47 = vshrl.u32 %v56_v31, 16  ;;  %v65_v50 = vshrl.u32 %v57_v38, 16 }
  0x20   :  { %v75_v48 = vmul.u32 2246822507, %v67_v40  ;;  %v76_v49 = vmul.u32 2246822507, %v68_v41  ;;  %v66_v51 = vshrl.u32 %v58_v39, 16  ;;  %v161_v54 = vcombine.high %v346_v44, %v346_v44 }
  0x21   :  { %v77_v52 = vmul.u32 2246822507, %v69_v42  ;;  %v78_v53 = vmul.u32 2246822507, %v70_v43  ;;  %v71_v55 = vxor.u32 %v63_v46, %v55_v30  ;;  %v72_v58 = vxor.u32 %v64_v47, %v56_v31 }
  0x22   :  { %v83_v56 = vshrl.u32 %v75_v48, 13  ;;  %v84_v57 = vshrl.u32 %v76_v49, 13  ;;  %v73_v59 = vxor.u32 %v65_v50, %v57_v38  ;;  %v74_v62 = vxor.u32 %v66_v51, %v58_v39 }
  0x23   :  { %v85_v60 = vshrl.u32 %v77_v52, 13  ;;  %v86_v61 = vshrl.u32 %v78_v53, 13  ;;  %v79_v63 = vmul.u32 2246822507, %v71_v55  ;;  %v80_v2 = vmul.u32 2246822507, %v72_v58 }
  0x24   :  { %v91_v0 = vxor.u32 %v83_v56, %v75_v48  ;;  %v92_v1 = vxor.u32 %v84_v57, %v76_v49  ;;  %v81_v3 = vmul.u32 2246822507, %v73_v59  ;;  %v82_v6 = vmul.u32 2246822507, %v74_v62  ;;  %v140_v48 = vld [vmem:[#allocation3 + $0x8] sm:$0xff] }
  0x25   :  { %v93_v4 = vxor.u32 %v85_v60, %v77_v52  ;;  %v94_v5 = vxor.u32 %v86_v61, %v78_v53  ;;  %v87_v7 = vshrl.u32 %v79_v63, 13  ;;  %v88_v10 = vshrl.u32 %v80_v2, 13 }
  0x26   :  { %v99_v8 = vmul.u32 3266489909, %v91_v0  ;;  %v100_v9 = vmul.u32 3266489909, %v92_v1  ;;  %v89_v12 = vshrl.u32 %v81_v3, 13  ;;  %v90_v15 = vshrl.u32 %v82_v6, 13 }
  0x27   :  { %v101_v13 = vmul.u32 3266489909, %v93_v4  ;;  %v102_v14 = vmul.u32 3266489909, %v94_v5  ;;  %v95_v16 = vxor.u32 %v87_v7, %v79_v63  ;;  %v96_v19 = vxor.u32 %v88_v10, %v80_v2 }
  0x28   :  { %v107_v17 = vshrl.u32 %v99_v8, 16  ;;  %v108_v18 = vshrl.u32 %v100_v9, 16  ;;  %v97_v20 = vxor.u32 %v89_v12, %v81_v3  ;;  %v98_v23 = vxor.u32 %v90_v15, %v82_v6 }
  0x29   :  { %v109_v21 = vshrl.u32 %v101_v13, 16  ;;  %v110_v22 = vshrl.u32 %v102_v14, 16  ;;  %v103_v24 = vmul.u32 3266489909, %v95_v16  ;;  %v104_v27 = vmul.u32 3266489909, %v96_v19 }
  0x2a   :  { %v115_v25 = vxor.u32 %v107_v17, %v99_v8  ;;  %v116_v26 = vxor.u32 %v108_v18, %v100_v9  ;;  %v105_v28 = vmul.u32 3266489909, %v97_v20  ;;  %v106_v31 = vmul.u32 3266489909, %v98_v23 }
  0x2b   :  { %v117_v29 = vxor.u32 %v109_v21, %v101_v13  ;;  %v118_v30 = vxor.u32 %v110_v22, %v102_v14  ;;  %v111_v32 = vshrl.u32 %v103_v24, 16  ;;  %v112_v35 = vshrl.u32 %v104_v27, 16 }
  0x2c   :  { %v123_v33 = vshrl.u32 %v115_v25, 1  ;;  %v124_v34 = vshrl.u32 %v116_v26, 1  ;;  %v113_v36 = vshrl.u32 %v105_v28, 16  ;;  %v114_v40 = vshrl.u32 %v106_v31, 16 }
  0x2d   :  { %v125_v38 = vshrl.u32 %v117_v29, 1  ;;  %v126_v39 = vshrl.u32 %v118_v30, 1  ;;  %v119_v41 = vxor.u32 %v111_v32, %v103_v24  ;;  %v120_v42 = vxor.u32 %v112_v35, %v104_v27 }
  0x2e   :  { %vm131_vm0 = vcmp.ge.s32.totalorder %v123_v33, 1073741824  ;;  %vm132_vm1 = vcmp.ge.s32.totalorder %v124_v34, 1073741824  ;;  %v121_v43 = vxor.u32 %v113_v36, %v105_v28  ;;  %v122_v52 = vxor.u32 %v114_v40, %v106_v31 }
  0x2f   :  { %vm133_vm2 = vcmp.ge.s32.totalorder %v125_v38, 1073741824  ;;  %vm134_vm3 = vcmp.ge.s32.totalorder %v126_v39, 1073741824  ;;  %v187_v46 = vsel %vm131_vm0, %v343_v37, 0.0  ;;  %v188_v47 = vsel %vm132_vm1, %v160_v45, 0.0 }
  0x30   :  { %v189_v49 = vsel %vm133_vm2, %v346_v44, 0.0  ;;  %v190_v50 = vsel %vm134_vm3, %v161_v54, 0.0  ;;  %v203_v51 = vcombine.low %v187_v46, %v188_v47  ;;  %v127_v55 = vshrl.u32 %v119_v41, 1 }
  0x31   :  { %v204_v53 = vcombine.low %v189_v49, %v190_v50  ;;  %v128_v56 = vshrl.u32 %v120_v42, 1  ;;  %v129_v57 = vshrl.u32 %v121_v43, 1  ;;  %v142_v59 = vmul.f32 2.0, %v140_v48 }
  0x32   :  { %v211_v58 = vrot.slane %v203_v51, %v340_v11  ;;  %v130_v61 = vshrl.u32 %v122_v52, 1  ;;  %vm135_vm4 = vcmp.ge.s32.totalorder %v127_v55, 1073741824 }
  0x33   :  { %v218_v60 = vrot.slane %v204_v53, %v340_v11  ;;  %v162_v62 = vcombine.high %v142_v59, %v142_v59  ;;  %v169_v37 = vrot.slane %v142_v59, %v340_v11  ;;  %vm136_vm5 = vcmp.ge.s32.totalorder %v128_v56, 1073741824 }
  0x34   :  { %vm137_vm6 = vcmp.ge.s32.totalorder %v129_v57, 1073741824  ;;  %vm138_vm7 = vcmp.ge.s32.totalorder %v130_v61, 1073741824 }
  0x35   :  { %v219_v45 = vcombine.low %v211_v58, %v218_v60  ;;  %v176_v44 = vrot.slane %v162_v62, %v340_v11  ;;  %v177_v54 = vcombine.high %v169_v37, %v169_v37  ;;  %v191_v63 = vsel %vm135_vm4, %v169_v37, 0.0 }
  0x37   :  { %239 = vst [vmem:[#allocation6] sm:$0xff] %v219_v45  ;;  %v178_v0 = vcombine.high %v176_v44, %v176_v44  ;;  %v192_v1 = vsel %vm136_vm5, %v177_v54, 0.0  ;;  %v193_v2 = vsel %vm137_vm6, %v176_v44, 0.0 }
  0x38   :  { %v220_v3 = vcombine.low %v191_v63, %v192_v1 }
  0x39   :  { %v194_v4 = vsel %vm138_vm7, %v178_v0, 0.0 }
  0x3a   :  { %v221_v5 = vcombine.low %v193_v2, %v194_v4  ;;  %v228_v6 = vrot.slane %v220_v3, %v340_v11 }
  0x3c   :  { %v235_v7 = vrot.slane %v221_v5, %v340_v11 }
  0x3e   :  { %v236_v8 = vcombine.low %v228_v6, %v235_v7 }
  0x40   :  { %240 = vst [vmem:[#allocation6 + $0x8] sm:$0xff] %v236_v8 }
  0x41   :  { %292 = shalt.err (!%p289_p12)
}
  0x42   :  { %s293_s27 = scalar_lea.hbm %s377_s2, 256 }
  0x43   :  { %p294_p13 = scmp.ne.s32.totalorder %s377_s2, %s293_s27  ;;  %p297_p0 = scmp.lt.u32.totalorder %s293_s27, %s377_s2 }
  0x45   :  { %p299_p1 = pnand %p297_p0, %p294_p13 }
  0x47   :  { %302 = shalt.err (!%p299_p1)
}
  0x48   :  { %250 = dma.vmem_to_hbm [thread:$0]  %s248_s1, 256, %s377_s2, [#allocation5]  }
  0x49   :  { %305 = dma.done.wait [#allocation5], 256  }
  0x4a   :  { %306 = vsyncadd [#allocation5], 4294967040 }
  0x4b   :  { %254 = vsyncpa [#allocation4], 1 }
  0x4c   :  { %255 = vsyncpa [#allocation5], 1 }

</bundles_post_ra>
